<compile_context>
chip_gen: v5e
topology: v5e:2x2
jax: 0.10.0
libtpu: 0.0.40
codegen_flags: <defaults>
</compile_context>

<pallas_src>
import functools

import jax
import jax.numpy as jnp
from jax.experimental import pallas as pl
from jax.experimental.pallas import tpu as pltpu

LANE = 128


def _round_up(n, m):
    return (n + m - 1) // m * m


def temporal_attn_kernel(x_ref, wqkv_ref, bqkv_ref, o_ref, *, hp):
    """One grid step: `block_b` batch elements, full (T, T) attention each.

    x_ref    : (block_b, T, F)        bf16
    wqkv_ref : (F, 2*hp + fp)         bf16   (fused, zero-padded Wq|Wk|Wv)
    bqkv_ref : (1, 2*hp + fp)         f32    (fused, zero-padded bq|bk|bv)
    o_ref    : (block_b, T, fp)       f32    (padded; wrapper slices to F)
    """
    x = x_ref[...]          # (block_b, T, F) bf16
    w = wqkv_ref[...]       # (F, N)          bf16, loaded once per grid step
    bias = bqkv_ref[...]    # (1, N) f32, broadcasts over (block_b, T)

    # Fused QKV projection for the whole batch block: one contraction over F
    # (equivalent to a (block_b*T, F) @ (F, N) matmul), f32 accumulation.
    qkv = jnp.einsum("btf,fn->btn", x, w,
                     preferred_element_type=jnp.float32) + bias

    q = qkv[..., :hp].astype(jnp.bfloat16)          # (block_b, T, hp)
    k = qkv[..., hp:2 * hp].astype(jnp.bfloat16)    # (block_b, T, hp)
    v = qkv[..., 2 * hp:].astype(jnp.bfloat16)      # (block_b, T, fp)

    # attn_scores = q @ k^T -- batched contraction on the last dims,
    # no transpose / relayout copy of k.
    s = jnp.einsum("btd,bsd->bts", q, k,
                   preferred_element_type=jnp.float32)   # (block_b, T, T)

    # Numerically stable softmax over the last axis, in f32.
    s = s - jnp.max(s, axis=-1, keepdims=True)
    p = jnp.exp(s)
    p = p * pl.reciprocal(jnp.sum(p, axis=-1, keepdims=True), approx=True)

    o = jnp.einsum("bts,bsf->btf", p.astype(jnp.bfloat16), v,
                   preferred_element_type=jnp.float32)   # (block_b, T, fp)
    o_ref[...] = o.astype(o_ref.dtype)


def temporal_attention(x, wq, bq, wk, bk, wv, bv, *, block_b=None):
    """x: (B, T, F) float32. Weights pre-transposed: wq/wk (F, H), wv (F, F)."""
    B, T, F = x.shape
    H = wq.shape[1]
    assert wq.shape == (F, H) and wk.shape == (F, H) and wv.shape == (F, F)

    Hp = _round_up(H, LANE)
    Fp = _round_up(F, LANE)
    N = 2 * Hp + Fp

    # Fuse + zero-pad Wq|Wk|Wv -> (F, 2*Hp + Fp) so q/k/v slices are
    # 128-lane aligned; padded columns contribute exactly zero.
    def pad_cols(w, n):
        return jnp.pad(w, ((0, 0), (0, n - w.shape[1])))

    def pad_bias(b, n):
        b = b.reshape(1, -1)
        return jnp.pad(b, ((0, 0), (0, n - b.shape[1])))

    wqkv = jnp.concatenate(
        [pad_cols(wq, Hp), pad_cols(wk, Hp), pad_cols(wv, Fp)],
        axis=1).astype(jnp.bfloat16)
    bqkv = jnp.concatenate(
        [pad_bias(bq, Hp), pad_bias(bk, Hp), pad_bias(bv, Fp)],
        axis=1).astype(jnp.float32)

    if block_b is None:
        # Keep >= 2 grid steps (v7x: 2 TensorCores on the parallel batch axis)
        # while amortizing per-step pipeline overhead for larger B.
        block_b = B // 2 if (B > 1 and B % 2 == 0) else B
    assert B % block_b == 0, "block_b must divide B"
    grid_b = B // block_b

    xb = x.astype(jnp.bfloat16)  # halves x's HBM->VMEM DMA bytes

    kernel = functools.partial(temporal_attn_kernel, hp=Hp)

    out_padded = pl.pallas_call(
        kernel,
        out_shape=jax.ShapeDtypeStruct((B, T, Fp), x.dtype),
        grid_spec=pltpu.PrefetchScalarGridSpec(
            num_scalar_prefetch=0,
            grid=(grid_b,),
            in_specs=[
                pl.BlockSpec((block_b, T, F), lambda b: (b, 0, 0)),  # x
                pl.BlockSpec((F, N), lambda b: (0, 0)),              # Wqkv
                pl.BlockSpec((1, N), lambda b: (0, 0)),              # bqkv
            ],
            out_specs=pl.BlockSpec((block_b, T, Fp), lambda b: (b, 0, 0)),
        ),
        compiler_params=pltpu.CompilerParams(
            dimension_semantics=("parallel",)),
    )(xb, wqkv, bqkv)

    # Drop the zero-padded columns (cheap XLA slice outside the kernel).
    return out_padded[..., :F]


def temporal_attention_ref(x, wq, bq, wk, bk, wv, bv):
    q = x @ wq + bq
    k = x @ wk + bk
    v = x @ wv + bv
    s = jnp.einsum("btd,bsd->bts", q, k)
    p = jax.nn.softmax(s, axis=-1)
    return jnp.einsum("bts,bsf->btf", p, v)


if __name__ == "__main__":
    B, T, F, H = 2, 8, 16, 32  # batch, seq, in_features, hidden_features

    key = jax.random.PRNGKey(0)
    kx, kwq, kbq, kwk, kbk, kwv, kbv = jax.random.split(key, 7)

    x = jax.random.normal(kx, (B, T, F), dtype=jnp.float32)

    # Deterministic synthetic parameters (shapes from nn.Linear in __init__),
    # stored as (in, out) so the kernel computes x @ W + b directly.
    wq = jax.random.normal(kwq, (F, H), dtype=jnp.float32) * 0.1
    bq = jax.random.normal(kbq, (1, H), dtype=jnp.float32) * 0.1
    wk = jax.random.normal(kwk, (F, H), dtype=jnp.float32) * 0.1
    bk = jax.random.normal(kbk, (1, H), dtype=jnp.float32) * 0.1
    wv = jax.random.normal(kwv, (F, F), dtype=jnp.float32) * 0.1
    bv = jax.random.normal(kbv, (1, F), dtype=jnp.float32) * 0.1

    out = temporal_attention(x, wq, bq, wk, bk, wv, bv)
    out = jax.block_until_ready(out)

    ref = temporal_attention_ref(x, wq, bq, wk, bk, wv, bv)
    assert out.shape == (B, T, F)
    # bf16 MXU inputs + approx reciprocal -> slightly looser tolerance than
    # the exact f32 path.
    assert jnp.allclose(out, ref, atol=2e-2, rtol=2e-2), "mismatch vs reference"

    print("KERNEL_OK")
</pallas_src>

<mosaic_0001>
module attributes {stable_mosaic.version = 11 : i64} {
  func.func @temporal_attn_kernel(%arg0: i32, %arg1: memref<1x8x16xbf16, #tpu.memory_space<vmem>>, %arg2: memref<16x384xbf16, #tpu.memory_space<vmem>>, %arg3: memref<1x384xf32, #tpu.memory_space<vmem>>, %arg4: memref<1x8x128xf32, #tpu.memory_space<vmem>>) attributes {dimension_semantics = [#tpu.dimension_semantics<parallel>], iteration_bounds = array<i64: 2>, scalar_prefetch = 0 : i64, scratch_operands = 0 : i64, tpu.core_type = #tpu.core_type<tc>, window_params = [{transform_indices = @transform_0, window_bounds = array<i64: 1, 8, 16>}, {pipeline_mode = #tpu.pipeline_mode<synchronous>, transform_indices = @transform_1, window_bounds = array<i64: 16, 384>}, {pipeline_mode = #tpu.pipeline_mode<synchronous>, transform_indices = @transform_2, window_bounds = array<i64: 1, 384>}, {transform_indices = @transform_3, window_bounds = array<i64: 1, 8, 128>}]} {
    %c0 = arith.constant 0 : index
    %c0_0 = arith.constant 0 : index
    %c0_1 = arith.constant 0 : index
    %0 = vector.load %arg1[%c0, %c0_0, %c0_1] : memref<1x8x16xbf16, #tpu.memory_space<vmem>>, vector<1x8x16xbf16>
    %c0_2 = arith.constant 0 : index
    %c0_3 = arith.constant 0 : index
    %1 = vector.load %arg2[%c0_2, %c0_3] : memref<16x384xbf16, #tpu.memory_space<vmem>>, vector<16x384xbf16>
    %c0_4 = arith.constant 0 : index
    %c0_5 = arith.constant 0 : index
    %2 = vector.load %arg3[%c0_4, %c0_5] : memref<1x384xf32, #tpu.memory_space<vmem>>, vector<1x384xf32>
    "tpu.trace_start"() <{level = 10 : i32, message = "btf,fn->btn"}> : () -> ()
    %cst = arith.constant dense<0.000000e+00> : vector<1x8x384xf32>
    %3 = tpu.matmul %0, %1, %cst {dimension_numbers = #tpu.dot_dimension_numbers<[2], [0], [0, 1], [1], [0, 0, 0, 1, 1, 1], [], []>} : vector<1x8x16xbf16>, vector<16x384xbf16>, vector<1x8x384xf32> -> vector<1x8x384xf32>
    "tpu.trace_stop"() : () -> ()
    %4 = vector.shape_cast %2 : vector<1x384xf32> to vector<1x1x384xf32>
    %5 = vector.broadcast %4 : vector<1x1x384xf32> to vector<1x8x384xf32>
    %6 = arith.addf %3, %5 : vector<1x8x384xf32>
    %7 = vector.extract_strided_slice %6 {offsets = [0, 0, 0], sizes = [1, 8, 128], strides = [1, 1, 1]} : vector<1x8x384xf32> to vector<1x8x128xf32>
    %8 = arith.truncf %7 : vector<1x8x128xf32> to vector<1x8x128xbf16>
    %9 = vector.extract_strided_slice %6 {offsets = [0, 0, 128], sizes = [1, 8, 128], strides = [1, 1, 1]} : vector<1x8x384xf32> to vector<1x8x128xf32>
    %10 = arith.truncf %9 : vector<1x8x128xf32> to vector<1x8x128xbf16>
    %11 = vector.extract_strided_slice %6 {offsets = [0, 0, 256], sizes = [1, 8, 128], strides = [1, 1, 1]} : vector<1x8x384xf32> to vector<1x8x128xf32>
    %12 = arith.truncf %11 : vector<1x8x128xf32> to vector<1x8x128xbf16>
    "tpu.trace_start"() <{level = 10 : i32, message = "btd,bsd->bts"}> : () -> ()
    %cst_6 = arith.constant dense<0.000000e+00> : vector<1x8x8xf32>
    %13 = tpu.matmul %8, %10, %cst_6 {dimension_numbers = #tpu.dot_dimension_numbers<[2], [2], [1], [1], [0, 0, 0, 1, 1, 1], [0], [0]>} : vector<1x8x128xbf16>, vector<1x8x128xbf16>, vector<1x8x8xf32> -> vector<1x8x8xf32>
    "tpu.trace_stop"() : () -> ()
    %cst_7 = arith.constant dense<0xFF800000> : vector<1x8xf32>
    %14 = vector.multi_reduction <maximumf>, %13, %cst_7 [2] : vector<1x8x8xf32> to vector<1x8xf32>
    %15 = vector.shape_cast %14 : vector<1x8xf32> to vector<1x8x1xf32>
    %16 = vector.broadcast %15 : vector<1x8x1xf32> to vector<1x8x8xf32>
    %17 = arith.subf %13, %16 : vector<1x8x8xf32>
    %18 = math.exp %17 : vector<1x8x8xf32>
    %cst_8 = arith.constant dense<0.000000e+00> : vector<1x8xf32>
    %19 = vector.multi_reduction <add>, %18, %cst_8 [2] : vector<1x8x8xf32> to vector<1x8xf32>
    %20 = vector.shape_cast %19 : vector<1x8xf32> to vector<1x8x1xf32>
    %21 = tpu.reciprocal %20 {approx = true} : vector<1x8x1xf32> -> vector<1x8x1xf32>
    %22 = vector.broadcast %21 : vector<1x8x1xf32> to vector<1x8x8xf32>
    %23 = arith.mulf %18, %22 : vector<1x8x8xf32>
    %24 = arith.truncf %23 : vector<1x8x8xf32> to vector<1x8x8xbf16>
    "tpu.trace_start"() <{level = 10 : i32, message = "bts,bsf->btf"}> : () -> ()
    %cst_9 = arith.constant dense<0.000000e+00> : vector<1x8x128xf32>
    %25 = tpu.matmul %24, %12, %cst_9 {dimension_numbers = #tpu.dot_dimension_numbers<[2], [1], [1], [2], [0, 0, 0, 1, 1, 2], [0], [0]>} : vector<1x8x8xbf16>, vector<1x8x128xbf16>, vector<1x8x128xf32> -> vector<1x8x128xf32>
    "tpu.trace_stop"() : () -> ()
    %c0_10 = arith.constant 0 : index
    %c0_11 = arith.constant 0 : index
    %c0_12 = arith.constant 0 : index
    %26 = vector.load %arg4[%c0_10, %c0_11, %c0_12] : memref<1x8x128xf32, #tpu.memory_space<vmem>>, vector<1x8x128xf32>
    tpu.vector_store %arg4[%c0_10, %c0_11, %c0_12], %25 {strides = array<i32>} : memref<1x8x128xf32, #tpu.memory_space<vmem>>, vector<1x8x128xf32>,
    return
  }
  func.func @transform_0(%arg0: i32) -> (i32, i32, i32) {
    %c0_i32 = arith.constant 0 : i32
    %c0_i32_0 = arith.constant 0 : i32
    %c0_i32_1 = arith.constant 0 : i32
    return %arg0, %c0_i32, %c0_i32_0 : i32, i32, i32
  }
  func.func @transform_1(%arg0: i32) -> (i32, i32) {
    %c0_i32 = arith.constant 0 : i32
    %c0_i32_0 = arith.constant 0 : i32
    %c0_i32_1 = arith.constant 0 : i32
    return %c0_i32, %c0_i32_0 : i32, i32
  }
  func.func @transform_2(%arg0: i32) -> (i32, i32) {
    %c0_i32 = arith.constant 0 : i32
    %c0_i32_0 = arith.constant 0 : i32
    %c0_i32_1 = arith.constant 0 : i32
    return %c0_i32, %c0_i32_0 : i32, i32
  }
  func.func @transform_3(%arg0: i32) -> (i32, i32, i32) {
    %c0_i32 = arith.constant 0 : i32
    %c0_i32_0 = arith.constant 0 : i32
    %c0_i32_1 = arith.constant 0 : i32
    return %arg0, %c0_i32, %c0_i32_0 : i32, i32, i32
  }
}

</mosaic_0001>

<bundles_post_ra>
// kernel: tpu_custom_call.1
= control target key start
LH: loop header
LB: loop body
LE: loop exit
PB: predicated region body
PF: predicated region fallthrough
CT: control target
= control target key end

     0   :  { %8 = vsyncpa [#allocation3], 0  ;;  %s893_s0 = inlined_call_operand.hbm [shape: bf16[2,8,16], index: 0, kind: input, shape index: {}]   ;;  %s894_s1 = inlined_call_operand.hbm [shape: bf16[16,384], index: 1, kind: input, shape index: {}]   ;;  %s895_s2 = inlined_call_operand.hbm [shape: f32[1,384], index: 2, kind: input, shape index: {}]   ;;  %s896_s3 = inlined_call_operand.hbm [shape: f32[2,8,128], index: 3, kind: output, shape index: {}]  }
   0x1   :  { %10 = vsyncpa [#allocation3 + $0x1], 0 }
   0x2   :  { %11 = vsyncpa [#allocation6], 0 }
   0x3   :  { %12 = vsyncpa [#allocation4], 0 }
   0x4   :  { %14 = vsyncpa [#allocation4 + $0x1], 0  ;;  %s741_s12 = smov 0   ;;  %s743_s13 = smov 0  }
   0x5   :  { %s745_s14 = smov 0   ;;  %s747_s15 = smov 0  }
   0x6 LB: > { %s130_s18 = sshll.u32 %s894_s1, 4  ;;  %s765_s19 = sadd.s32 4294967295, %s715_s15   ;;  %s715_s15 = sphi %s747_s15, %s907_s15   ;;  %s711_s14 = sphi %s745_s14, %s906_s14   ;;  %s707_s13 = sphi %s743_s13, %s905_s13   ;;  %s703_s12 = sphi %s741_s12, %s904_s12   ;;  %s131_s18 = int_to_ptr.hbm [resolvable:$true] %s130_s18 }
   0x7   : > { %p448_p0 = scmp.ge.s32.totalorder %s715_s15, 1  ;;  %p41_p1 = scmp.eq.s32.totalorder %s765_s19, 0 }
   0x8   : > { %p119_p2 = scmp.lt.s32.totalorder %s715_s15, 3  ;;  %s717_s21 = smov [#allocation5]  }
   0x9   : > { %s132_s22 = sshll.u32 %s717_s21, 4  ;;  %s145_s25 = sshll.u32 %s895_s2, 4  ;;  %s133_s22 = int_to_ptr.vmem [resolvable:$true] %s132_s22  ;;  %s146_s25 = int_to_ptr.hbm [resolvable:$true] %s145_s25 }
   0xa   : > { %p770_p3 = pnand %p448_p0, %p119_p2  ;;  %s718_s26 = smov [#allocation7]  }
   0xb   : > { %s147_s27 = sshll.u32 %s718_s26, 4  ;;  %s719_s28 = smov 192   ;;  %s148_s27 = int_to_ptr.vmem [resolvable:$true] %s147_s27 }
   0xc   : > { %p494_p4 = pneg %p770_p3  ;;  %s720_s29 = smov 12  }
   0xd   : > { %s447_s30 = sadd.s32 4294967294, %s715_s15   ;;  %s784_s4 = sadd.s32 1, %s715_s15  }
   0xe   : > { %p495_p6 = pnand %p494_p4, %p41_p1  ;;  %s24_s5 = ssub.s32 %s715_s15, %s784_s4 }
   0xf   : > { %s27_s6 = sadd.s32 1, %s711_s14  ;;  %p25_p7 = scmp.eq.s32.totalorder %s24_s5, 0 }
  0x10   : > { %497 = dma.hbm_to_vmem [thread:$0]  (!%p495_p6), %s131_s18, 384, %s133_s22, [#allocation6], %s719_s28, %s719_s28, %s720_s29  }
  0x11   : > { %500 = dma.hbm_to_vmem [thread:$0]  (!%p495_p6), %s146_s25, 48, %s148_s27, [#allocation6]  }
  0x12   : > { %p34_p8 = scmp.ne.s32.totalorder %s711_s14, %s707_s13  ;;  %p35_p9 = scmp.eq.s32.totalorder %s715_s15, 0 }
  0x13   : > { %p40_p10 = scmp.ne.s32.totalorder %s707_s13, %s703_s12  ;;  %p106_p13 = scmp.eq.s32.totalorder %s765_s19, 1 }
  0x14   : > { %s795_s7 = scalar_select %p25_p7, %s711_s14, %s27_s6  }
  0x15   : > { %p797_p11 = por %p35_p9, %p34_p8  ;;  %p803_p12 = por %p41_p1, %p40_p10 }
  0x16   : > { %p112_p0 = scmp.eq.s32.totalorder %s447_s30, 1  ;;  %p511_p2 = scmp.lt.s32.totalorder %s715_s15, 2 }
  0x17   : > { %s158_s10 = sand.u32 1, %s711_s14   ;;  %p810_p4 = por %p106_p13, %p34_p8 }
  0x18   : > { %p814_p6 = por %p112_p0, %p40_p10  ;;  %s452_s17 = sshll.u32 %s158_s10, 2 }
  0x19   : > { %s453_s18 = sshll.u32 %s715_s15, 2  ;;  %s162_s24 = scalar_lea.vmem [#allocation2], %s452_s17 }
  0x1a   : > { %s166_s23 = scalar_lea.hbm %s893_s0, %s453_s18  ;;  %s170_s25 = sshll.u32 %s162_s24, 4  ;;  %s171_s25 = int_to_ptr.vmem [resolvable:$true] %s170_s25 }
  0x1b   : > { %s168_s26 = sshll.u32 %s166_s23, 4  ;;  %p824_p7 = pnand %p511_p2, %p797_p11  ;;  %s169_s26 = int_to_ptr.hbm [resolvable:$true] %s168_s26 }
  0x1c   : > { %s159_s28 = scalar_lea.sflag [#allocation3], %s158_s10  ;;  %s615_s29 = sshra.s32 %s169_s26, 4  ;;  %s616_s29 = int_to_ptr.hbm [resolvable:$true] %s615_s29 }
  0x1d   : > { %s617_s30 = scalar_lea.hbm %s616_s29, 4  ;;  %p619_p9 = pneg %p824_p7 }
  0x1e   : > { %p618_p8 = scmp.ne.s32.totalorder %s616_s29, %s617_s30  ;;  %s622_s17 = scalar_lea.hbm %s893_s0, 8 }
  0x1f   : > { %p623_p11 = scmp.lt.s32.totalorder %s616_s29, %s893_s0  ;;  %p624_p0 = scmp.lt.s32.totalorder %s622_s17, %s617_s30 }
  0x20   : > { %p620_p10 = pnand %p619_p9, %p618_p8 }
  0x21   : > { %p625_p2 = por %p624_p0, %p623_p11 }
  0x22   : > { %p621_p13 = pneg %p620_p10 }
  0x24   : > { %p626_p5 = pnand %p625_p2, %p621_p13 }
  0x26   : > { %629 = shalt.err (!%p626_p5)
}
  0x27   : > { %504 = dma.hbm_to_vmem [thread:$0]  (!%p824_p7), %s169_s26, 64, %s171_s25, %s159_s28  }
  0x28   : > { %179 = sbr.rel (%p770_p3) target bundleno = 714 (0x2ca), region = 32  ;;  %s841_s10 = sand.u32 (!%p770_p3), 1, %s707_s13  }
  0x29   : > { %s455_s21 = sshll.u32 (!%p770_p3), %s841_s10, 2  ;;  %s182_s22 = scalar_lea.sflag (!%p770_p3), [#allocation3], %s841_s10 }
  0x2a   : > { %s185_s23 = scalar_lea.vmem (!%p770_p3), [#allocation2], %s455_s21 }
  0x2d   : > { %690 = dma.done.wait (%p803_p12), %s182_s22, 64  }
  0x2e   : > { %692 = vsyncadd (%p803_p12), %s182_s22, 4294967232 }
  0x2f   : > { %694 = dma.done.wait (%p41_p1), [#allocation6], 432  }
  0x30   : > { %696 = vsyncadd (%p41_p1), [#allocation6], 4294966864  ;;  %v461_v0 = vld [vmem:[#allocation5] sm:$0xf]  ;;  %v480_v1 = vld [vmem:[#allocation5 + $0x8] sm:$0xf0] }
  0x31   : > { %v479_v2 = vld [vmem:[#allocation5 + $0x4] sm:$0xf]  ;;  %v462_v3 = vor.u32 %v480_v1, %v461_v0  ;;  %v463_v4 = vld [vmem:[#allocation5 + $0xc] sm:$0xf0]  ;;  %v220_v6 = vld [vmem:[%s185_s23] sm:$0xf] }
  0x32   : > { %v466_v5 = vor.u32 %v479_v2, %v463_v4  ;;  %vm249_vm0 = vcmask 130048   ;;  %v225_v7 = vld [vmem:[#allocation7] sm:$0x7]  ;;  %v469_v18 = vld [vmem:[#allocation5 + $0x8] sm:$0xf]  ;;  %vm308_vm1 = vcmask 64512  }
  0x33   : > { %260 = vmatpush.bf16.msra.mxu0 %v462_v3  ;;  %v228_v8 = vperm.slane %v225_v7, 1  ;;  %v227_v10 = vperm.slane %v225_v7, 0  ;;  %v481_v19 = vld [vmem:[#allocation5 + $0x10] sm:$0xf0]  ;;  %v229_v24 = vperm.slane %v225_v7, 2  ;;  %vm324_vm2 = vcmask 1043456  }
  0x34   : > { %273 = vmatpush.bf16.msra.mxu1 %v466_v5  ;;  %v470_v20 = vor.u32 %v481_v19, %v469_v18  ;;  %s476_s20 = sshll.u32 %s765_s19, 3  ;;  %s458_s9 = sshll.u32 %s841_s10, 3 }
  0x35   : > { %s353_s26 = scalar_lea.hbm %s896_s3, %s476_s20  ;;  %s218_s27 = scalar_lea.vmem [#allocation8], %s458_s9 }
  0x36   : > { %471 = vmatmul.msk.bf16.vlgmr.msra.gmra.mxu0 %vm249_vm0, %v220_v6  ;;  %286 = vmatpush.bf16.msra.mxu2 %v470_v20  ;;  %s355_s28 = sshll.u32 %s218_s27, 4  ;;  %s357_s29 = sshll.u32 %s353_s26, 4  ;;  %s356_s28 = int_to_ptr.vmem [resolvable:$true] %s355_s28  ;;  %s358_s29 = int_to_ptr.hbm [resolvable:$true] %s357_s29 }
  0x37   : > { %472 = vmatmul.msk.bf16.vlgmr.msra.gmra.mxu1 %vm249_vm0, %v220_v6  ;;  %s343_s30 = scalar_lea.sflag [#allocation4], %s841_s10  ;;  %s659_s5 = sshra.s32 %s358_s29, 4  ;;  %s660_s5 = int_to_ptr.hbm [resolvable:$true] %s659_s5 }
  0x38   : > { %s661_s6 = scalar_lea.hbm %s660_s5, 8  ;;  %s665_s18 = scalar_lea.hbm %s896_s3, 16 }
  0x39   : > { %473 = vmatmul.msk.bf16.vlgmr.msra.gmra.mxu2 %vm249_vm0, %v220_v6  ;;  %p662_p1 = scmp.ne.s32.totalorder %s660_s5, %s661_s6  ;;  %p666_p12 = scmp.lt.s32.totalorder %s660_s5, %s896_s3 }
  0x3a   : > { %p667_p7 = scmp.lt.s32.totalorder %s665_s18, %s661_s6 }
  0x3b   : > { %p663_p3 = pnand %p662_p1, %p810_p4 }
  0x3c   : > { %p668_p8 = por %p667_p7, %p666_p12 }
  0x3d   : > { %p664_p5 = pneg %p663_p3 }
  0x3f   : > { %p669_p9 = pnand %p668_p8, %p664_p5 }
  0xb3   : > { %v262_v9 = vpop.f32.mrf.mxu0 }
  0xb4   : > { %v275_v11 = vpop.f32.mrf.mxu1  ;;  %v263_v14 = vadd.f32 %v262_v9, %v227_v10 }
  0xb5   : > { %v276_v12 = vadd.f32 %v275_v11, %v228_v8 }
  0xb6   : > { %v292_v16 = vpack.c.bf16 %v263_v14, %v263_v14 }
  0xb7   : > { %v293_v13 = vpack.c.bf16 %v276_v12, %v276_v12 }
  0xb9   : > { %302 = vmatpush.bf16.xpose.msra.mxu3 %v293_v13 }
  0xbb   : > { %v264_v15 = vpop.f32.mrf.mxu0 }
  0xbc   : > { %v277_v17 = vpop.f32.mrf.mxu1  ;;  %v288_v25 = vpop.f32.mrf.mxu2 }
  0xbd   : > { %v289_v26 = vadd.f32 %v288_v25, %v229_v24 }
  0xbf   : > { %v294_v27 = vpack.c.bf16 %v289_v26, %v289_v26 }
  0xc0   : > { %303 = vmatmul.bf16.vlgmr.msra.gmra.mxu3 %v292_v16 }
  0xc1   : > { %v326_v30 = vsel %vm324_vm2, %v294_v27, 0 }
  0xc2   : > { %335 = vmatpush.bf16.msrb.mxu0 %v326_v30 }
  0xc4   : > { %v290_v32 = vpop.f32.mrf.mxu2 }
 0x143   : > { %v304_v21 = vpop.f32.mrf.mxu3 }
 0x144   : > { %v309_v22 = vsel %vm308_vm1, %v304_v21, -inf }
 0x145   : > { %310 = vmax.xlane.f32.xlu0 %v309_v22 }
 0x14b   : > { %v306_v23 = vpop.f32.mrf.mxu3 }
 0x1b8   : > { %v311_v28 = vpop.xlane.xlu0 %310 }
 0x1b9   : > { %v312_v29 = vsub.f32 %v304_v21, %v311_v28 }
 0x1bb   : > { %v313_v31 = vmul.f32 1.442695, %v312_v29 }
 0x1bd   : > { %551 = vpow2.f32 %v313_v31 }
 0x1c3   : > { %v552_v33 = vpop.eup %551 }
 0x1c4   : > { %v315_v34 = vsel %vm308_vm1, %v552_v33, 0.0 }
 0x1c5   : > { %316 = vadd.xlane.f32.xlu0 %v315_v34 }
 0x238   : > { %v317_v35 = vpop.xlane.xlu0 %316 }
 0x239   : > { %553 = vrcp.f32 %v317_v35 }
 0x23f   : > { %v554_v36 = vpop.eup %553 }
 0x240   : > { %v319_v37 = vmul.f32 %v554_v36, %v552_v33 }
 0x242   : > { %v320_v38 = vpack.c.bf16 %v319_v37, %v319_v37 }
 0x244   : > { %474 = vmatmul.msk.bf16.vlgmr.msrb.gmra.mxu0 %vm308_vm1, %v320_v38 }
 0x2c1   : > { %v337_v39 = vpop.f32.mrf.mxu0 }
 0x2c2   : > { %341 = vst [vmem:[%s218_s27] sm:$0xff] %v337_v39 }
 0x2c3   : > { %672 = shalt.err (!%p669_p9)
}
 0x2c4   : > { %492 = dma.vmem_to_hbm [thread:$0]  (%p810_p4), %s356_s28, 128, %s358_s29, %s343_s30  }
 0x2c9   : > { %v339_v40 = vpop.f32.mrf.mxu0 }
 0x2ca PF: > { %s369_s10 = sand.u32 1, %s703_s12   ;;  %p903_p10 = scmp.ge.s32.totalorder %s715_s15, 2 }
 0x2cb   : > { %s370_s22 = scalar_lea.sflag [#allocation4], %s369_s10 }
 0x2cc   : > { %p506_p13 = pnand %p903_p10, %p814_p6 }
 0x2ce   : > { %p507_p11 = pneg %p506_p13 }
 0x2d0   : > { %698 = dma.done.wait (%p507_p11), %s370_s22, 128  }
 0x2d1   : > { %700 = vsyncadd (%p507_p11), %s370_s22, 4294967168  ;;  %p17_p0 = scmp.ge.s32.totalorder %s784_s4, 4   ;;  %s904_s12 = smov %s707_s13 }
 0x2d2   : > { %s905_s13 = smov %s711_s14  ;;  %s906_s14 = smov %s795_s7 }
 0x2d3   : > { %s907_s15 = smov %s784_s4  ;;  %19 = sbr.rel (!%p17_p0) target bundleno = 6 (0x6), region = 85 }
 0x2d8   :  { %376 = vsyncpa [#allocation3], 1 }
 0x2d9   :  { %378 = vsyncpa [#allocation3 + $0x1], 1 }
 0x2da   :  { %379 = vsyncpa [#allocation6], 1 }
 0x2db   :  { %380 = vsyncpa [#allocation4], 1 }
 0x2dc   :  { %382 = vsyncpa [#allocation4 + $0x1], 1 }

</bundles_post_ra>
